<compile_context>
chip_gen: v7x
topology: tpu7x:2x2x1
jax: 0.10.0
libtpu: 0.0.40
codegen_flags: <defaults>
</compile_context>

<pallas_src>
import jax
import jax.numpy as jnp
from jax.experimental import pallas as pl
from jax.experimental.pallas import tpu as pltpu

HIDDEN = 256
OUT = 28 * 28          # 784
NEG_SLOPE = 0.01       # PyTorch F.leaky_relu default


def _round_up(n: int, m: int) -> int:
    return ((n + m - 1) // m) * m


def decoder_dense_kernel(x_ref, w1_ref, b1_ref, w2_ref, b2_ref, o_ref):
    # x_ref:  (TM, L)         bf16
    # w1_ref: (L, HIDDEN)     bf16   (resident across grid steps)
    # b1_ref: (1, HIDDEN)     f32    (resident)
    # w2_ref: (HIDDEN, OUT)   bf16   (resident)
    # b2_ref: (1, OUT)        f32    (resident)
    # o_ref:  (TM, OUT)       f32 (or bf16)
    h = jnp.dot(x_ref[...], w1_ref[...], preferred_element_type=jnp.float32)
    h = h + b1_ref[...]
    h = jnp.where(h >= 0, h, NEG_SLOPE * h)            # LeakyReLU(0.01)
    y = jnp.dot(h.astype(jnp.bfloat16), w2_ref[...],
                preferred_element_type=jnp.float32)
    o_ref[...] = (y + b2_ref[...]).astype(o_ref.dtype)


def prepare_params(w1, b1, w2, b2):
    """One-time parameter prep (hoisted out of the per-call path).

    Takes PyTorch nn.Linear layout (out, in) and returns transposed / cast
    tensors ready for the kernel.  Do this once and reuse across calls.
    """
    assert w1.shape[0] == HIDDEN and b1.shape == (HIDDEN,)
    assert w2.shape == (OUT, HIDDEN) and b2.shape == (OUT,)
    w1_t = w1.T.astype(jnp.bfloat16)                       # (L, HIDDEN)
    b1_2d = b1.reshape(1, HIDDEN).astype(jnp.float32)      # (1, HIDDEN)
    w2_t = w2.T.astype(jnp.bfloat16)                       # (HIDDEN, OUT)
    b2_2d = b2.reshape(1, OUT).astype(jnp.float32)         # (1, OUT)
    return w1_t, b1_2d, w2_t, b2_2d


def decoder_dense_apply(x, w1_t, b1_2d, w2_t, b2_2d, *,
                        tm_max=1024, out_dtype=jnp.float32):
    """Forward pass using pre-prepared params.

    x: (B, L) float32 (or bf16).  Returns (B, OUT) in `out_dtype`.
    """
    B, L = x.shape
    assert w1_t.shape == (L, HIDDEN)

    # Batch padding / tile size: sublane multiple of 8, tile <= tm_max.
    b_pad = _round_up(B, 8)
    tm = min(tm_max, b_pad)
    b_pad = _round_up(b_pad, tm)

    x_p = x.astype(jnp.bfloat16)
    if b_pad != B:
        x_p = jnp.zeros((b_pad, L), jnp.bfloat16).at[:B].set(x_p)

    grid = (b_pad // tm,)

    out_itemsize = jnp.dtype(out_dtype).itemsize
    cost = pl.CostEstimate(
        flops=2 * b_pad * (L * HIDDEN + HIDDEN * OUT),
        transcendentals=0,
        bytes_accessed=(b_pad * L * 2                 # x (bf16)
                        + L * HIDDEN * 2              # W1 (bf16)
                        + HIDDEN * OUT * 2            # W2 (bf16)
                        + (HIDDEN + OUT) * 4          # biases (f32)
                        + b_pad * OUT * out_itemsize  # y
                        ),
    )

    y_p = pl.pallas_call(
        decoder_dense_kernel,
        out_shape=jax.ShapeDtypeStruct((b_pad, OUT), out_dtype),
        grid=grid,
        in_specs=[
            pl.BlockSpec((tm, L), lambda i: (i, 0)),            # x tile pipelines
            pl.BlockSpec((L, HIDDEN), lambda i: (0, 0)),        # W1^T resident
            pl.BlockSpec((1, HIDDEN), lambda i: (0, 0)),        # b1 resident
            pl.BlockSpec((HIDDEN, OUT), lambda i: (0, 0)),      # W2^T resident
            pl.BlockSpec((1, OUT), lambda i: (0, 0)),           # b2 resident
        ],
        # Out last dim = 784 = full array dim -> legal block, lane-dense
        # except the final 16-lane tail (masked vst).  No pad-then-slice.
        out_specs=pl.BlockSpec((tm, OUT), lambda i: (i, 0)),
        compiler_params=pltpu.CompilerParams(
            dimension_semantics=("parallel",),        # batch axis shards on v7x TCs
            vmem_limit_bytes=32 * 1024 * 1024,        # room for TM=1024 on v5e too
        ),
        cost_estimate=cost,
    )(x_p, w1_t, b1_2d, w2_t, b2_2d)

    # Only the (cheap) batch-row pad is sliced off; no column slice anymore.
    return y_p if b_pad == B else y_p[:B]


def decoder_dense(x, w1, b1, w2, b2, *, tm_max=1024, out_dtype=jnp.float32):
    """Convenience wrapper taking raw PyTorch-layout params."""
    return decoder_dense_apply(x, *prepare_params(w1, b1, w2, b2),
                               tm_max=tm_max, out_dtype=out_dtype)


def init_params(key, n_latent_dims):
    """Deterministic init mimicking nn.Linear default U(-1/sqrt(fan_in), 1/sqrt(fan_in))."""
    k1, k2, k3, k4 = jax.random.split(key, 4)
    bound1 = 1.0 / jnp.sqrt(n_latent_dims)
    bound2 = 1.0 / jnp.sqrt(HIDDEN)
    w1 = jax.random.uniform(k1, (HIDDEN, n_latent_dims), jnp.float32, -bound1, bound1)
    b1 = jax.random.uniform(k2, (HIDDEN,), jnp.float32, -bound1, bound1)
    w2 = jax.random.uniform(k3, (OUT, HIDDEN), jnp.float32, -bound2, bound2)
    b2 = jax.random.uniform(k4, (OUT,), jnp.float32, -bound2, bound2)
    return w1, b1, w2, b2


def reference_bf16(x, w1, b1, w2, b2):
    """Reference matching the kernel's bf16-input / f32-accumulate numerics."""
    xb = x.astype(jnp.bfloat16).astype(jnp.float32)
    w1b = w1.astype(jnp.bfloat16).astype(jnp.float32)
    w2b = w2.astype(jnp.bfloat16).astype(jnp.float32)
    h = xb @ w1b.T + b1
    h = jnp.where(h >= 0, h, NEG_SLOPE * h)
    hb = h.astype(jnp.bfloat16).astype(jnp.float32)
    return hb @ w2b.T + b2


def reference_f32(x, w1, b1, w2, b2):
    h = x @ w1.T + b1
    h = jnp.where(h >= 0, h, NEG_SLOPE * h)
    return h @ w2.T + b2


if __name__ == "__main__":
    key = jax.random.PRNGKey(0)
    batch = 2
    n_latent_dims = 32

    kx, kp = jax.random.split(key)
    x = jax.random.normal(kx, (batch, n_latent_dims), jnp.float32)
    w1, b1, w2, b2 = init_params(kp, n_latent_dims)

    # One-time param prep (transpose / cast) hoisted out of the call path.
    params = prepare_params(w1, b1, w2, b2)
    params = jax.tree_util.tree_map(jax.block_until_ready, params)

    y = decoder_dense_apply(x, *params)
    y = jax.block_until_ready(y)
    assert y.shape == (batch, OUT)
    assert y.dtype == jnp.float32

    # Tight check vs a reference that mirrors the kernel's bf16 casts.
    y_ref_bf16 = reference_bf16(x, w1, b1, w2, b2)
    assert jnp.allclose(y, y_ref_bf16, atol=2e-3, rtol=2e-3), "mismatch vs bf16 reference"

    # Loose sanity check vs the full-f32 PyTorch-equivalent forward.
    y_ref_f32 = reference_f32(x, w1, b1, w2, b2)
    assert jnp.allclose(y, y_ref_f32, atol=5e-2, rtol=5e-2), "mismatch vs f32 reference"

    print("KERNEL_OK")
</pallas_src>

<mosaic_0001>
module attributes {stable_mosaic.version = 11 : i64} {
  func.func @decoder_dense_kernel(%arg0: i32, %arg1: memref<8x32xbf16, #tpu.memory_space<vmem>>, %arg2: memref<32x256xbf16, #tpu.memory_space<vmem>>, %arg3: memref<1x256xf32, #tpu.memory_space<vmem>>, %arg4: memref<256x784xbf16, #tpu.memory_space<vmem>>, %arg5: memref<1x784xf32, #tpu.memory_space<vmem>>, %arg6: memref<8x784xf32, #tpu.memory_space<vmem>>) attributes {dimension_semantics = [#tpu.dimension_semantics<parallel>], iteration_bounds = array<i64: 1>, scalar_prefetch = 0 : i64, scratch_operands = 0 : i64, tpu.core_type = #tpu.core_type<tc>, window_params = [{transform_indices = @transform_0, window_bounds = array<i64: 8, 32>}, {pipeline_mode = #tpu.pipeline_mode<synchronous>, transform_indices = @transform_1, window_bounds = array<i64: 32, 256>}, {pipeline_mode = #tpu.pipeline_mode<synchronous>, transform_indices = @transform_2, window_bounds = array<i64: 1, 256>}, {pipeline_mode = #tpu.pipeline_mode<synchronous>, transform_indices = @transform_3, window_bounds = array<i64: 256, 784>}, {pipeline_mode = #tpu.pipeline_mode<synchronous>, transform_indices = @transform_4, window_bounds = array<i64: 1, 784>}, {transform_indices = @transform_5, window_bounds = array<i64: 8, 784>}]} {
    %c0 = arith.constant 0 : index
    %c0_0 = arith.constant 0 : index
    %0 = vector.load %arg1[%c0, %c0_0] : memref<8x32xbf16, #tpu.memory_space<vmem>>, vector<8x32xbf16>
    %c0_1 = arith.constant 0 : index
    %c0_2 = arith.constant 0 : index
    %1 = vector.load %arg2[%c0_1, %c0_2] : memref<32x256xbf16, #tpu.memory_space<vmem>>, vector<32x256xbf16>
    %cst = arith.constant dense<0.000000e+00> : vector<8x256xf32>
    %2 = tpu.matmul %0, %1, %cst {dimension_numbers = #tpu.dot_dimension_numbers<[1], [0], [0], [1], [0, 0, 1, 1], [], []>} : vector<8x32xbf16>, vector<32x256xbf16>, vector<8x256xf32> -> vector<8x256xf32>
    %c0_3 = arith.constant 0 : index
    %c0_4 = arith.constant 0 : index
    %3 = vector.load %arg3[%c0_3, %c0_4] : memref<1x256xf32, #tpu.memory_space<vmem>>, vector<1x256xf32>
    %4 = vector.broadcast %3 : vector<1x256xf32> to vector<8x256xf32>
    %5 = arith.addf %2, %4 : vector<8x256xf32>
    %cst_5 = arith.constant 0.000000e+00 : f32
    %6 = vector.broadcast %cst_5 : f32 to vector<8x256xf32>
    %7 = arith.cmpf oge, %5, %6 : vector<8x256xf32>
    %cst_6 = arith.constant 0.00999999977 : f32
    %8 = vector.broadcast %cst_6 : f32 to vector<8x256xf32>
    %9 = arith.mulf %8, %5 : vector<8x256xf32>
    %10 = arith.select %7, %5, %9 : vector<8x256xi1>, vector<8x256xf32>
    %11 = arith.truncf %10 : vector<8x256xf32> to vector<8x256xbf16>
    %c0_7 = arith.constant 0 : index
    %c0_8 = arith.constant 0 : index
    %12 = vector.load %arg4[%c0_7, %c0_8] : memref<256x784xbf16, #tpu.memory_space<vmem>>, vector<256x784xbf16>
    %cst_9 = arith.constant dense<0.000000e+00> : vector<8x784xf32>
    %13 = tpu.matmul %11, %12, %cst_9 {dimension_numbers = #tpu.dot_dimension_numbers<[1], [0], [0], [1], [0, 0, 1, 1], [], []>} : vector<8x256xbf16>, vector<256x784xbf16>, vector<8x784xf32> -> vector<8x784xf32>
    %c0_10 = arith.constant 0 : index
    %c0_11 = arith.constant 0 : index
    %14 = vector.load %arg5[%c0_10, %c0_11] : memref<1x784xf32, #tpu.memory_space<vmem>>, vector<1x784xf32>
    %15 = vector.broadcast %14 : vector<1x784xf32> to vector<8x784xf32>
    %16 = arith.addf %13, %15 : vector<8x784xf32>
    %c0_12 = arith.constant 0 : index
    %c0_13 = arith.constant 0 : index
    %17 = vector.load %arg6[%c0_12, %c0_13] : memref<8x784xf32, #tpu.memory_space<vmem>>, vector<8x784xf32>
    tpu.vector_store %arg6[%c0_12, %c0_13], %16 {strides = array<i32>} : memref<8x784xf32, #tpu.memory_space<vmem>>, vector<8x784xf32>,
    return
  }
  func.func @transform_0(%arg0: i32) -> (i32, i32) {
    %c0_i32 = arith.constant 0 : i32
    %c0_i32_0 = arith.constant 0 : i32
    return %arg0, %c0_i32 : i32, i32
  }
  func.func @transform_1(%arg0: i32) -> (i32, i32) {
    %c0_i32 = arith.constant 0 : i32
    %c0_i32_0 = arith.constant 0 : i32
    %c0_i32_1 = arith.constant 0 : i32
    return %c0_i32, %c0_i32_0 : i32, i32
  }
  func.func @transform_2(%arg0: i32) -> (i32, i32) {
    %c0_i32 = arith.constant 0 : i32
    %c0_i32_0 = arith.constant 0 : i32
    %c0_i32_1 = arith.constant 0 : i32
    return %c0_i32, %c0_i32_0 : i32, i32
  }
  func.func @transform_3(%arg0: i32) -> (i32, i32) {
    %c0_i32 = arith.constant 0 : i32
    %c0_i32_0 = arith.constant 0 : i32
    %c0_i32_1 = arith.constant 0 : i32
    return %c0_i32, %c0_i32_0 : i32, i32
  }
  func.func @transform_4(%arg0: i32) -> (i32, i32) {
    %c0_i32 = arith.constant 0 : i32
    %c0_i32_0 = arith.constant 0 : i32
    %c0_i32_1 = arith.constant 0 : i32
    return %c0_i32, %c0_i32_0 : i32, i32
  }
  func.func @transform_5(%arg0: i32) -> (i32, i32) {
    %c0_i32 = arith.constant 0 : i32
    %c0_i32_0 = arith.constant 0 : i32
    return %arg0, %c0_i32 : i32, i32
  }
}

</mosaic_0001>

<bundles_post_ra>
// kernel: tpu_custom_call.1
= control target key start
LH: loop header
LB: loop body
LE: loop exit
PB: predicated region body
PF: predicated region fallthrough
CT: control target
= control target key end

     0   :  { %v1369_v2 = vmov 0   ;;  %vm59_vm0 = vcmask 261120   ;;  %s1793_s0 = inlined_call_operand.vmem [shape: bf16[8,32], index: 0, kind: input, shape index: {}]   ;;  %s1794_s1 = inlined_call_operand.vmem [shape: bf16[32,256], index: 1, kind: input, shape index: {}]   ;;  %s1795_s2 = inlined_call_operand.vmem [shape: f32[1,256], index: 2, kind: input, shape index: {}]   ;;  %s1796_s3 = inlined_call_operand.vmem [shape: bf16[256,784], index: 3, kind: input, shape index: {}]   ;;  %s1797_s4 = inlined_call_operand.vmem [shape: f32[1,784], index: 4, kind: input, shape index: {}]   ;;  %s1798_s5 = inlined_call_operand.hbm [shape: f32[8,784], index: 5, kind: output, shape index: {}]  }
   0x1   :  { %v1179_v0 = vld [vmem:[%s1794_s1 + $0x4] ss:$8 sps:$4 sm:$0xff]   ;;  %v1181_v1 = vld [vmem:[%s1794_s1] ss:$8 sps:$4 sm:$0xff]   ;;  %95 = vmatprep.mubr.bf16.mxu0 %v1369_v2  ;;  %v1182_v3 = vld [vmem:[%s1794_s1 + $0x14] ss:$8 sps:$4 sm:$0xff]  }
   0x2   :  { %63 = vmatprep.subr.bf16.mxu0 %v1179_v0  ;;  %v1184_v4 = vld [vmem:[%s1794_s1 + $0x10] ss:$8 sps:$4 sm:$0xff]   ;;  %v1185_v5 = vld [vmem:[%s1796_s3 + $0x4] ss:$28 sps:$4 sm:$0xff]   ;;  %v1189_v7 = vld [vmem:[%s1796_s3 + $0xc] ss:$28 sps:$4 sm:$0xff]  }
   0x3   :  { %64 = vmatpush1.bf16.msra.mxu0 %v1181_v1  ;;  %v22_v6 = vld [vmem:[%s1793_s0] sm:$0xf]  ;;  %853 = vmatprep.subr.bf16.mxu1 %v1185_v5  ;;  %v1191_v9 = vld [vmem:[%s1796_s3 + $0x3c] ss:$28 sps:$4 sm:$0xff]   ;;  %v1187_v10 = vld [vmem:[%s1796_s3 + $0x8] ss:$28 sps:$4 sm:$0xff]  }
   0x4   :  { %65 = vmatprep.subr.bf16.mxu0 %v1182_v3  ;;  %v1190_v8 = vld [vmem:[%s1796_s3] ss:$28 sps:$4 sm:$0xff]   ;;  %v1196_v12 = vld [vmem:[%s1796_s3 + $0x38] ss:$28 sps:$4 sm:$0xff]   ;;  %v1202_v16 = vld [vmem:[%s1796_s3 + $0x70] ss:$28 sps:$4 sm:$0xff]  }
   0x5   :  { %854 = vmatpush1.bf16.msra.mxu1 %v1190_v8  ;;  %v1195_v11 = vld [vmem:[%s1796_s3 + $0x44] ss:$28 sps:$4 sm:$0xff]   ;;  %v1197_v13 = vld [vmem:[%s1796_s3 + $0x74] ss:$28 sps:$4 sm:$0xff]   ;;  %v1201_v15 = vld [vmem:[%s1796_s3 + $0x7c] ss:$28 sps:$4 sm:$0xff]  }
   0x6   :  { %855 = vmatprep.subr.bf16.mxu1 %v1191_v9  ;;  %v1193_v14 = vld [vmem:[%s1796_s3 + $0x40] ss:$28 sps:$4 sm:$0xff]   ;;  %v1203_v17 = vld [vmem:[%s1796_s3 + $0xac] ss:$28 sps:$4 sm:$0xff]   ;;  %v1199_v18 = vld [vmem:[%s1796_s3 + $0x78] ss:$28 sps:$4 sm:$0xff]  }
   0x7   :  { %66 = vmatpush1.bf16.msra.mxu0 %v1184_v4  ;;  %v1207_v19 = vld [vmem:[%s1796_s3 + $0xb4] ss:$28 sps:$4 sm:$0xff]   ;;  %v1208_v20 = vld [vmem:[%s1796_s3 + $0xa8] ss:$28 sps:$4 sm:$0xff]   ;;  %v1214_v24 = vld [vmem:[%s1796_s3 + $0xe0] ss:$28 sps:$4 sm:$0xff]  }
   0x8   :  { %894 = vmatprep.subr.bf16.mxu0 %v1189_v7  ;;  %v1209_v21 = vld [vmem:[%s1796_s3 + $0xe4] ss:$28 sps:$4 sm:$0xff]   ;;  %v1205_v22 = vld [vmem:[%s1796_s3 + $0xb0] ss:$28 sps:$4 sm:$0xff]   ;;  %v1215_v25 = vld [vmem:[%s1796_s3 + $0x11c] ss:$28 sps:$4 sm:$0xff]  }
   0x9   :  { %856 = vmatpush1.bf16.msra.mxu1 %v1196_v12  ;;  %v1213_v23 = vld [vmem:[%s1796_s3 + $0xec] ss:$28 sps:$4 sm:$0xff]   ;;  %v1219_v27 = vld [vmem:[%s1796_s3 + $0x124] ss:$28 sps:$4 sm:$0xff]   ;;  %v1220_v28 = vld [vmem:[%s1796_s3 + $0x118] ss:$28 sps:$4 sm:$0xff]  }
   0xa   :  { %1042 = vmatmul.mubr.msk.bf16.vlgmr.msra.gmra.mrb[0].mxu0 %vm59_vm0, %v22_v6  ;;  %857 = vmatprep.subr.bf16.mxu1 %v1197_v13  ;;  %v1211_v26 = vld [vmem:[%s1796_s3 + $0xe8] ss:$28 sps:$4 sm:$0xff]   ;;  %v1221_v29 = vld [vmem:[%s1796_s3 + $0x154] ss:$28 sps:$4 sm:$0xff]   ;;  %v1217_v30 = vld [vmem:[%s1796_s3 + $0x120] ss:$28 sps:$4 sm:$0xff]  }
   0xb   :  { %895 = vmatpush1.bf16.msra.mxu0 %v1187_v10  ;;  %v1225_v31 = vld [vmem:[%s1796_s3 + $0x15c] ss:$28 sps:$4 sm:$0xff]   ;;  %v1226_v32 = vld [vmem:[%s1796_s3 + $0x150] ss:$28 sps:$4 sm:$0xff]   ;;  %v1232_v36 = vld [vmem:[%s1796_s3 + $0x188] ss:$28 sps:$4 sm:$0xff]  }
   0xc   :  { %896 = vmatprep.subr.bf16.mxu0 %v1195_v11  ;;  %v1227_v33 = vld [vmem:[%s1796_s3 + $0x18c] ss:$28 sps:$4 sm:$0xff]   ;;  %v1223_v34 = vld [vmem:[%s1796_s3 + $0x158] ss:$28 sps:$4 sm:$0xff]   ;;  %v1233_v37 = vld [vmem:[%s1796_s3 + $0x1c4] ss:$28 sps:$4 sm:$0xff]  }
   0xd   :  { %858 = vmatpush1.bf16.msra.mxu1 %v1202_v16  ;;  %v1231_v35 = vld [vmem:[%s1796_s3 + $0x194] ss:$28 sps:$4 sm:$0xff]   ;;  %v1237_v39 = vld [vmem:[%s1796_s3 + $0x1cc] ss:$28 sps:$4 sm:$0xff]   ;;  %v1238_v40 = vld [vmem:[%s1796_s3 + $0x1c0] ss:$28 sps:$4 sm:$0xff]  }
   0xe   :  { %859 = vmatprep.subr.bf16.mxu1 %v1203_v17  ;;  %v1229_v38 = vld [vmem:[%s1796_s3 + $0x190] ss:$28 sps:$4 sm:$0xff]   ;;  %v1239_v41 = vld [vmem:[%s1796_s3 + $0x1fc] ss:$28 sps:$4 sm:$0xff]   ;;  %v1235_v42 = vld [vmem:[%s1796_s3 + $0x1c8] ss:$28 sps:$4 sm:$0xff]  }
   0xf   :  { %897 = vmatpush1.bf16.msra.mxu0 %v1193_v14  ;;  %v1244_v43 = vld [vmem:[%s1796_s3 + $0x1f8] ss:$28 sps:$4 sm:$0xff]   ;;  %v1243_v44 = vld [vmem:[%s1796_s3 + $0x204] ss:$28 sps:$4 sm:$0xff]   ;;  %v1250_v47 = vld [vmem:[%s1796_s3 + $0x230] ss:$28 sps:$4 sm:$0xff]  }
  0x10   :  { %898 = vmatprep.subr.bf16.mxu0 %v1201_v15  ;;  %v1245_v45 = vld [vmem:[%s1796_s3 + $0x234] ss:$28 sps:$4 sm:$0xff]   ;;  %v1241_v46 = vld [vmem:[%s1796_s3 + $0x200] ss:$28 sps:$4 sm:$0xff]   ;;  %v1251_v49 = vld [vmem:[%s1796_s3 + $0x26c] ss:$28 sps:$4 sm:$0xff]  }
  0x11   :  { %860 = vmatpush1.bf16.msra.mxu1 %v1208_v20  ;;  %v1249_v48 = vld [vmem:[%s1796_s3 + $0x23c] ss:$28 sps:$4 sm:$0xff]   ;;  %v1256_v51 = vld [vmem:[%s1796_s3 + $0x268] ss:$28 sps:$4 sm:$0xff]   ;;  %v1255_v52 = vld [vmem:[%s1796_s3 + $0x274] ss:$28 sps:$4 sm:$0xff]  }
  0x12   :  { %861 = vmatprep.subr.bf16.mxu1 %v1209_v21  ;;  %v1247_v50 = vld [vmem:[%s1796_s3 + $0x238] ss:$28 sps:$4 sm:$0xff]   ;;  %v1257_v53 = vld [vmem:[%s1796_s3 + $0x2a4] ss:$28 sps:$4 sm:$0xff]   ;;  %v1253_v54 = vld [vmem:[%s1796_s3 + $0x270] ss:$28 sps:$4 sm:$0xff]  }
  0x13   :  { %899 = vmatpush1.bf16.msra.mxu0 %v1199_v18  ;;  %v1262_v55 = vld [vmem:[%s1796_s3 + $0x2a0] ss:$28 sps:$4 sm:$0xff]   ;;  %v1261_v56 = vld [vmem:[%s1796_s3 + $0x2ac] ss:$28 sps:$4 sm:$0xff]   ;;  %v1268_v59 = vld [vmem:[%s1796_s3 + $0x2d8] ss:$28 sps:$4 sm:$0xff]  }
  0x14   :  { %900 = vmatprep.subr.bf16.mxu0 %v1207_v19  ;;  %v1263_v57 = vld [vmem:[%s1796_s3 + $0x2dc] ss:$28 sps:$4 sm:$0xff]   ;;  %v1259_v58 = vld [vmem:[%s1796_s3 + $0x2a8] ss:$28 sps:$4 sm:$0xff]  }
  0x15   :  { %862 = vmatpush1.bf16.msra.mxu1 %v1214_v24  ;;  %v1267_v60 = vld [vmem:[%s1796_s3 + $0x2e4] ss:$28 sps:$4 sm:$0xff]  }
  0x16   :  { %863 = vmatprep.subr.bf16.mxu1 %v1215_v25  ;;  %v1265_v61 = vld [vmem:[%s1796_s3 + $0x2e0] ss:$28 sps:$4 sm:$0xff]  }
  0x17   :  { %901 = vmatpush1.bf16.msra.mxu0 %v1205_v22 }
  0x18   :  { %902 = vmatprep.subr.bf16.mxu0 %v1213_v23 }
  0x19   :  { %864 = vmatpush1.bf16.msra.mxu1 %v1220_v28 }
  0x1a   :  { %865 = vmatprep.subr.bf16.mxu1 %v1221_v29 }
  0x1b   :  { %903 = vmatpush1.bf16.msra.mxu0 %v1211_v26 }
  0x1c   :  { %904 = vmatprep.subr.bf16.mxu0 %v1219_v27 }
  0x1d   :  { %866 = vmatpush1.bf16.msra.mxu1 %v1226_v32 }
  0x1e   :  { %867 = vmatprep.subr.bf16.mxu1 %v1227_v33 }
  0x1f   :  { %905 = vmatpush1.bf16.msra.mxu0 %v1217_v30 }
  0x20   :  { %906 = vmatprep.subr.bf16.mxu0 %v1225_v31 }
  0x21   :  { %868 = vmatpush1.bf16.msra.mxu1 %v1232_v36 }
  0x22   :  { %869 = vmatprep.subr.bf16.mxu1 %v1233_v37 }
  0x23   :  { %907 = vmatpush1.bf16.msra.mxu0 %v1223_v34 }
  0x24   :  { %908 = vmatprep.subr.bf16.mxu0 %v1231_v35 }
  0x25   :  { %870 = vmatpush1.bf16.msra.mxu1 %v1238_v40 }
  0x26   :  { %871 = vmatprep.subr.bf16.mxu1 %v1239_v41 }
  0x27   :  { %909 = vmatpush1.bf16.msra.mxu0 %v1229_v38 }
  0x28   :  { %910 = vmatprep.subr.bf16.mxu0 %v1237_v39 }
  0x29   :  { %872 = vmatpush1.bf16.msra.mxu1 %v1244_v43 }
  0x2a   :  { %873 = vmatprep.subr.bf16.mxu1 %v1245_v45 }
  0x2b   :  { %911 = vmatpush1.bf16.msra.mxu0 %v1235_v42 }
  0x2c   :  { %912 = vmatprep.subr.bf16.mxu0 %v1243_v44 }
  0x2d   :  { %874 = vmatpush1.bf16.msra.mxu1 %v1250_v47 }
  0x2e   :  { %875 = vmatprep.subr.bf16.mxu1 %v1251_v49 }
  0x2f   :  { %913 = vmatpush1.bf16.msra.mxu0 %v1241_v46 }
  0x30   :  { %914 = vmatprep.subr.bf16.mxu0 %v1249_v48 }
  0x31   :  { %876 = vmatpush1.bf16.msra.mxu1 %v1256_v51 }
  0x32   :  { %877 = vmatprep.subr.bf16.mxu1 %v1257_v53 }
  0x33   :  { %915 = vmatpush1.bf16.msra.mxu0 %v1247_v50 }
  0x34   :  { %916 = vmatprep.subr.bf16.mxu0 %v1255_v52 }
  0x35   :  { %878 = vmatpush1.bf16.msra.mxu1 %v1262_v55 }
  0x36   :  { %879 = vmatprep.subr.bf16.mxu1 %v1263_v57 }
  0x37   :  { %917 = vmatpush1.bf16.msra.mxu0 %v1253_v54 }
  0x38   :  { %918 = vmatprep.subr.bf16.mxu0 %v1261_v56 }
  0x39   :  { %880 = vmatpush1.bf16.msra.mxu1 %v1268_v59 }
  0x3b   :  { %919 = vmatpush1.bf16.msra.mxu0 %v1259_v58 }
  0x3c   :  { %920 = vmatprep.subr.bf16.mxu0 %v1267_v60 }
  0x3f   :  { %921 = vmatpush1.bf16.msra.mxu0 %v1265_v61 }
  0x40   :  { %10 = vsyncpa [#allocation3], 0  ;;  %v1269_v62 = vld [vmem:[%s1796_s3 + $0x314] ss:$28 sps:$4 sm:$0xff]   ;;  %v1273_v63 = vld [vmem:[%s1796_s3 + $0x31c] ss:$28 sps:$4 sm:$0xff]   ;;  %v29_v8 = vlaneseq }
  0x41   :  { %v1271_v0 = vld [vmem:[%s1796_s3 + $0x318] ss:$28 sps:$4 sm:$0xff]   ;;  %v1274_v1 = vld [vmem:[%s1796_s3 + $0x310] ss:$28 sps:$4 sm:$0xff]   ;;  %881 = vmatprep.subr.bf16.mxu1 %v1269_v62  ;;  %922 = vmatprep.subr.bf16.mxu0 %v1273_v63  ;;  %v1280_v5 = vld [vmem:[%s1796_s3 + $0x348] ss:$28 sps:$4 sm:$0xff]  }
  0x42   :  { %882 = vmatpush1.bf16.msra.mxu1 %v1274_v1  ;;  %v1275_v2 = vld [vmem:[%s1796_s3 + $0x34c] ss:$28 sps:$4 sm:$0xff]   ;;  %v1279_v3 = vld [vmem:[%s1796_s3 + $0x354] ss:$28 sps:$4 sm:$0xff]   ;;  %v1614_v9 = vshrl.u32 %v29_v8, 7  ;;  %vm1022_vm3 = vcmask 130048  }
  0x43   :  { %923 = vmatpush1.bf16.msra.mxu0 %v1271_v0  ;;  %v1277_v4 = vld [vmem:[%s1796_s3 + $0x350] ss:$28 sps:$4 sm:$0xff]   ;;  %883 = vmatprep.subr.bf16.mxu1 %v1275_v2  ;;  %v1284_v7 = vld [vmem:[%s1796_s3 + $0x1d8] ss:$28 sps:$4 sm:$0xff]   ;;  %v27_v11 = vld [vmem:[%s1795_s2] sm:$0x3] }
  0x44   :  { %924 = vmatprep.subr.bf16.mxu0 %v1279_v3  ;;  %v1283_v6 = vld [vmem:[%s1796_s3 + $0x14] ss:$28 sps:$4 sm:$0xff]   ;;  %v31_v10 = vsub.s32 0, %v1614_v9  ;;  %v35_v12 = vsub.s32 1, %v1614_v9  ;;  %v1288_v29 = vld [vmem:[%s1796_s3 + $0x4c] ss:$28 sps:$4 sm:$0xff]  }
  0x45   :  { %v1281_v26 = vld [vmem:[%s1796_s3 + $0x10] ss:$28 sps:$4 sm:$0xff]   ;;  %v1285_v27 = vld [vmem:[%s1796_s3 + $0x18] ss:$28 sps:$4 sm:$0xff]   ;;  %v1286_v31 = vld [vmem:[%s1796_s3 + $0x48] ss:$28 sps:$4 sm:$0xff]  }
  0x46   :  { %884 = vmatpush1.bf16.msra.mxu1 %v1280_v5  ;;  %v32_v13 = vrot.slane %v27_v11, %v31_v10  ;;  %v36_v14 = vrot.slane %v27_v11, %v35_v12  ;;  %v1289_v30 = vld [vmem:[%s1796_s3 + $0x210] ss:$28 sps:$4 sm:$0xff]   ;;  %v1293_v33 = vld [vmem:[%s1796_s3 + $0x84] ss:$28 sps:$4 sm:$0xff]   ;;  %v1298_v37 = vld [vmem:[%s1796_s3 + $0xbc] ss:$28 sps:$4 sm:$0xff]  }
  0x47   :  { %925 = vmatpush1.bf16.msra.mxu0 %v1277_v4  ;;  %935 = vmatprep.subr.bf16.mxu1 %v1283_v6  ;;  %v1290_v32 = vld [vmem:[%s1796_s3 + $0x50] ss:$28 sps:$4 sm:$0xff]   ;;  %v1294_v34 = vld [vmem:[%s1796_s3 + $0x248] ss:$28 sps:$4 sm:$0xff]   ;;  %v1291_v35 = vld [vmem:[%s1796_s3 + $0x80] ss:$28 sps:$4 sm:$0xff]  }
  0x48   :  { %1155 = vmatprep.subr.bf16.mxu0 %v1284_v7  ;;  %v1295_v36 = vld [vmem:[%s1796_s3 + $0x88] ss:$28 sps:$4 sm:$0xff]   ;;  %v1299_v38 = vld [vmem:[%s1796_s3 + $0x280] ss:$28 sps:$4 sm:$0xff]   ;;  %v1296_v39 = vld [vmem:[%s1796_s3 + $0xb8] ss:$28 sps:$4 sm:$0xff]  }
  0x49   :  { %v1300_v40 = vld [vmem:[%s1796_s3 + $0xc0] ss:$28 sps:$4 sm:$0xff]   ;;  %v1303_v41 = vld [vmem:[%s1796_s3 + $0xf4] ss:$28 sps:$4 sm:$0xff]   ;;  %v1308_v45 = vld [vmem:[%s1796_s3 + $0x12c] ss:$28 sps:$4 sm:$0xff]  }
  0x4a   :  { %v1304_v42 = vld [vmem:[%s1796_s3 + $0x2b8] ss:$28 sps:$4 sm:$0xff]   ;;  %v1301_v43 = vld [vmem:[%s1796_s3 + $0xf0] ss:$28 sps:$4 sm:$0xff]   ;;  %v1306_v47 = vld [vmem:[%s1796_s3 + $0x128] ss:$28 sps:$4 sm:$0xff]  }
  0x4b   :  { %v1305_v44 = vld [vmem:[%s1796_s3 + $0xf8] ss:$28 sps:$4 sm:$0xff]   ;;  %v1309_v46 = vld [vmem:[%s1796_s3 + $0x2f0] ss:$28 sps:$4 sm:$0xff]   ;;  %v1313_v49 = vld [vmem:[%s1796_s3 + $0x164] ss:$28 sps:$4 sm:$0xff]  }
  0x4c   :  { %v1310_v48 = vld [vmem:[%s1796_s3 + $0x130] ss:$28 sps:$4 sm:$0xff]   ;;  %v1314_v50 = vld [vmem:[%s1796_s3 + $0x328] ss:$28 sps:$4 sm:$0xff]   ;;  %v1311_v51 = vld [vmem:[%s1796_s3 + $0x160] ss:$28 sps:$4 sm:$0xff]  }
  0x4d   :  { %v1315_v52 = vld [vmem:[%s1796_s3 + $0x168] ss:$28 sps:$4 sm:$0xff]   ;;  %v1318_v53 = vld [vmem:[%s1796_s3 + $0x19c] ss:$28 sps:$4 sm:$0xff]   ;;  %v1323_v57 = vld [vmem:[%s1796_s3 + $0x1d4] ss:$28 sps:$4 sm:$0xff]  }
  0x4e   :  { %v1319_v54 = vld [vmem:[%s1796_s3 + $0x360] ss:$28 sps:$4 sm:$0xff]   ;;  %v1316_v55 = vld [vmem:[%s1796_s3 + $0x198] ss:$28 sps:$4 sm:$0xff]   ;;  %v1321_v58 = vld [vmem:[%s1796_s3 + $0x1d0] ss:$28 sps:$4 sm:$0xff]  }
  0x4f   :  { %v1320_v56 = vld [vmem:[%s1796_s3 + $0x1a0] ss:$28 sps:$4 sm:$0xff]   ;;  %v1326_v59 = vld [vmem:[%s1796_s3 + $0x20c] ss:$28 sps:$4 sm:$0xff]   ;;  %v1330_v0 = vld [vmem:[%s1796_s3 + $0x278] ss:$28 sps:$4 sm:$0xff]  }
  0x50   :  { %v1324_v60 = vld [vmem:[%s1796_s3 + $0x208] ss:$28 sps:$4 sm:$0xff]   ;;  %v1327_v62 = vld [vmem:[%s1796_s3 + $0x240] ss:$28 sps:$4 sm:$0xff]   ;;  %v1335_v1 = vld [vmem:[%s1796_s3 + $0x2b4] ss:$28 sps:$4 sm:$0xff]  }
  0x51   :  { %v1329_v61 = vld [vmem:[%s1796_s3 + $0x244] ss:$28 sps:$4 sm:$0xff]   ;;  %v1332_v63 = vld [vmem:[%s1796_s3 + $0x27c] ss:$28 sps:$4 sm:$0xff]   ;;  %v1333_v2 = vld [vmem:[%s1796_s3 + $0x2b0] ss:$28 sps:$4 sm:$0xff]  }
  0x52   :  { %v1338_v3 = vld [vmem:[%s1796_s3 + $0x2ec] ss:$28 sps:$4 sm:$0xff]   ;;  %v1341_v5 = vld [vmem:[%s1796_s3 + $0x324] ss:$28 sps:$4 sm:$0xff]   ;;  %v1344_v7 = vld [vmem:[%s1796_s3 + $0x35c] ss:$28 sps:$4 sm:$0xff]  }
  0x53   :  { %v1336_v4 = vld [vmem:[%s1796_s3 + $0x2e8] ss:$28 sps:$4 sm:$0xff]   ;;  %v1339_v6 = vld [vmem:[%s1796_s3 + $0x320] ss:$28 sps:$4 sm:$0xff]   ;;  %v1342_v8 = vld [vmem:[%s1796_s3 + $0x358] ss:$28 sps:$4 sm:$0xff]  }
  0x54   :  { %v252_v11 = vsub.s32 2, %v1614_v9  ;;  %s1370_s3 = smov [#allocation2]  }
  0xdd   :  { %v97_v15 = vpop.f32.mrb[0].mxu0 }
  0xde   :  { %v98_v16 = vadd.f32 %v97_v15, %v32_v13  ;;  %v99_v17 = vpop.f32.mrb[1].mxu0  ;;  %v240_v13 = vld [vmem:[%s1797_s4] sm:$0x7f]  ;;  %s1030_s4 = sshll.u32 %s1370_s3, 4  ;;  %s1031_s4 = int_to_ptr.vmem [resolvable:$true] %s1030_s4 }
  0xdf   :  { %v100_v18 = vadd.f32 %v99_v17, %v36_v14  ;;  %v101_v19 = vpop.f32.mrb[2].mxu0  ;;  %v256_v14 = vsub.s32 3, %v1614_v9  ;;  %v245_v15 = vrot.slane %v240_v13, %v31_v10  ;;  %v249_v17 = vrot.slane %v240_v13, %v35_v12  ;;  %s1345_s10 = scalar_lea.vmem %s1031_s4, 896  ;;  %p1350_p1 = scmp.lt.s32.totalorder %s1031_s4, %s1031_s4 }
  0xe0   :  { %vm104_vm1 = vcmp.ge.f32.partialorder %v98_v16, 0.0  ;;  %v106_v20 = vmul.f32 0.01, %v98_v16  ;;  %v102_v21 = vpop.f32.mrb[3].mxu0  ;;  %v268_v10 = vsub.s32 6, %v1614_v9  ;;  %p1346_p0 = scmp.ne.s32.totalorder %s1031_s4, %s1345_s10  ;;  %p1351_p2 = scmp.lt.s32.totalorder %s1345_s10, %s1345_s10 }
  0xe1   :  { %vm105_vm2 = vcmp.ge.f32.partialorder %v100_v18, 0.0  ;;  %v107_v22 = vmul.f32 0.01, %v100_v18 }
  0xe2   :  { %v108_v23 = vsel %vm104_vm1, %v98_v16, %v106_v20  ;;  %v253_v16 = vrot.slane %v240_v13, %v252_v11  ;;  %p1352_p3 = por %p1351_p2, %p1350_p1 }
  0xe3   :  { %v109_v24 = vsel %vm105_vm2, %v100_v18, %v107_v22  ;;  %v1631_v28 = vpack.c.bf16 %v108_v23, %v108_v23  ;;  %v257_v18 = vrot.slane %v240_v13, %v256_v14 }
  0xe4   :  { %v111_v25 = vpack.c.bf16 %v109_v24, %v109_v24  ;;  %p1353_p4 = pnand %p1352_p3, %p1346_p0 }
  0xe6   :  { %885 = vmatprep.mubr.bf16.mxu1 %v111_v25  ;;  %926 = vmatprep.mubr.bf16.mxu0 %v111_v25 }
  0xe7   :  { %886 = vmatmul.mubr.bf16.vlgmr.msra.gmra.mrb[0].mxu1 %v1631_v28  ;;  %927 = vmatmul.mubr.bf16.vlgmr.msra.gmra.mrb[4].mxu0 %v1631_v28 }
  0xe8   :  { %936 = vmatpush1.bf16.msra.mxu1 %v1281_v26  ;;  %1156 = vmatpush3.bf16.msra.mxu0 %v1285_v27 }
  0xe9   :  { %967 = vmatprep.mubr.bf16.mxu1 %v111_v25  ;;  %1008 = vmatprep.mubr.bf16.mxu0 %v111_v25 }
  0xea   :  { %937 = vmatprep.subr.bf16.mxu1 %v1288_v29  ;;  %1157 = vmatprep.subr.bf16.mxu0 %v1289_v30 }
  0xec   :  { %938 = vmatpush1.bf16.msra.mxu1 %v1286_v31  ;;  %1158 = vmatpush3.bf16.msra.mxu0 %v1290_v32  ;;  %v269_v31 = vrot.slane %v240_v13, %v268_v10 }
  0xed   :  { %939 = vmatprep.subr.bf16.mxu1 %v1293_v33  ;;  %1159 = vmatprep.subr.bf16.mxu0 %v1294_v34 }
  0xf0   :  { %940 = vmatpush1.bf16.msra.mxu1 %v1291_v35  ;;  %1160 = vmatpush3.bf16.msra.mxu0 %v1295_v36 }
  0xf1   :  { %941 = vmatprep.subr.bf16.mxu1 %v1298_v37  ;;  %1161 = vmatprep.subr.bf16.mxu0 %v1299_v38  ;;  %v260_v37 = vsub.s32 4, %v1614_v9  ;;  %v264_v38 = vsub.s32 5, %v1614_v9 }
  0xf4   :  { %942 = vmatpush1.bf16.msra.mxu1 %v1296_v39  ;;  %1162 = vmatpush3.bf16.msra.mxu0 %v1300_v40  ;;  %v261_v39 = vrot.slane %v240_v13, %v260_v37  ;;  %v265_v40 = vrot.slane %v240_v13, %v264_v38 }
  0xf5   :  { %943 = vmatprep.subr.bf16.mxu1 %v1303_v41  ;;  %1163 = vmatprep.subr.bf16.mxu0 %v1304_v42 }
  0xf8   :  { %944 = vmatpush1.bf16.msra.mxu1 %v1301_v43  ;;  %1164 = vmatpush3.bf16.msra.mxu0 %v1305_v44 }
  0xf9   :  { %945 = vmatprep.subr.bf16.mxu1 %v1308_v45  ;;  %1165 = vmatprep.subr.bf16.mxu0 %v1309_v46 }
  0xfc   :  { %946 = vmatpush1.bf16.msra.mxu1 %v1306_v47  ;;  %1166 = vmatpush3.bf16.msra.mxu0 %v1310_v48 }
  0xfd   :  { %947 = vmatprep.subr.bf16.mxu1 %v1313_v49  ;;  %1167 = vmatprep.subr.bf16.mxu0 %v1314_v50 }
 0x100   :  { %948 = vmatpush1.bf16.msra.mxu1 %v1311_v51  ;;  %1168 = vmatpush3.bf16.msra.mxu0 %v1315_v52 }
 0x101   :  { %949 = vmatprep.subr.bf16.mxu1 %v1318_v53  ;;  %1169 = vmatprep.subr.bf16.mxu0 %v1319_v54 }
 0x104   :  { %950 = vmatpush1.bf16.msra.mxu1 %v1316_v55  ;;  %1170 = vmatpush3.bf16.msra.mxu0 %v1320_v56 }
 0x105   :  { %951 = vmatprep.subr.bf16.mxu1 %v1323_v57 }
 0x107   :  { %1009 = vmatmul.mubr.bf16.vlgmr.msra.gmra.mrb[8].mxu0 %v1631_v28 }
 0x108   :  { %952 = vmatpush1.bf16.msra.mxu1 %v1321_v58 }
 0x109   :  { %953 = vmatprep.subr.bf16.mxu1 %v1326_v59 }
 0x10c   :  { %954 = vmatpush1.bf16.msra.mxu1 %v1324_v60 }
 0x10d   :  { %955 = vmatprep.subr.bf16.mxu1 %v1329_v61 }
 0x110   :  { %956 = vmatpush1.bf16.msra.mxu1 %v1327_v62 }
 0x111   :  { %957 = vmatprep.subr.bf16.mxu1 %v1332_v63 }
 0x114   :  { %958 = vmatpush1.bf16.msra.mxu1 %v1330_v0 }
 0x115   :  { %959 = vmatprep.subr.bf16.mxu1 %v1335_v1 }
 0x118   :  { %960 = vmatpush1.bf16.msra.mxu1 %v1333_v2 }
 0x119   :  { %961 = vmatprep.subr.bf16.mxu1 %v1338_v3 }
 0x11c   :  { %962 = vmatpush1.bf16.msra.mxu1 %v1336_v4 }
 0x11d   :  { %963 = vmatprep.subr.bf16.mxu1 %v1341_v5 }
 0x120   :  { %964 = vmatpush1.bf16.msra.mxu1 %v1339_v6 }
 0x121   :  { %965 = vmatprep.subr.bf16.mxu1 %v1344_v7 }
 0x124   :  { %966 = vmatpush1.bf16.msra.mxu1 %v1342_v8 }
 0x127   :  { %968 = vmatmul.mubr.bf16.vlgmr.msra.gmra.mrb[4].mxu1 %v1631_v28 }
 0x1ba   :  { %v887_v19 = vpop.f32.mrb[0].mxu1  ;;  %v928_v20 = vpop.f32.mrb[4].mxu0 }
 0x1bb   :  { %v888_v21 = vadd.f32 %v887_v19, %v245_v15  ;;  %v929_v22 = vadd.f32 %v928_v20, %v253_v16  ;;  %v889_v23 = vpop.f32.mrb[1].mxu1  ;;  %v930_v24 = vpop.f32.mrb[5].mxu0 }
 0x1bc   :  { %v890_v25 = vadd.f32 %v889_v23, %v249_v17  ;;  %v931_v26 = vadd.f32 %v930_v24, %v257_v18  ;;  %v891_v27 = vpop.f32.mrb[2].mxu1  ;;  %v932_v28 = vpop.f32.mrb[6].mxu0 }
 0x1bd   :  { %1016 = vst [vmem:[#allocation2] sm:$0xff] %v888_v21  ;;  %1018 = vst [vmem:[#allocation2 + $0x10] sm:$0xff] %v929_v22  ;;  %v892_v29 = vpop.f32.mrb[3].mxu1  ;;  %v933_v30 = vpop.f32.mrb[7].mxu0 }
 0x1be   :  { %1017 = vst [vmem:[#allocation2 + $0x8] sm:$0xff] %v890_v25  ;;  %1019 = vst [vmem:[#allocation2 + $0x18] sm:$0xff] %v931_v26 }
 0x1da   :  { %v1171_v12 = vpop.f32.mrb[8].mxu0 }
 0x1db   :  { %v1172_v32 = vpop.f32.mrb[9].mxu0 }
 0x1dc   :  { %v1173_v33 = vadd.f32 %v1172_v32, %v1171_v12  ;;  %v1174_v34 = vpop.f32.mrb[10].mxu0 }
 0x1dd   :  { %v1175_v35 = vpop.f32.mrb[11].mxu0 }
 0x1de   :  { %v1011_v36 = vadd.f32 %v1173_v33, %v269_v31 }
 0x1e0   :  { %1023 = vst.msk [vmem:[#allocation2 + $0x30] sm:$0xff] %vm1022_vm3, %v1011_v36 }
 0x1fa   :  { %v969_v41 = vpop.f32.mrb[4].mxu1 }
 0x1fb   :  { %v970_v42 = vadd.f32 %v969_v41, %v261_v39  ;;  %v971_v43 = vpop.f32.mrb[5].mxu1 }
 0x1fc   :  { %v972_v44 = vadd.f32 %v971_v43, %v265_v40  ;;  %v973_v45 = vpop.f32.mrb[6].mxu1 }
 0x1fd   :  { %1020 = vst [vmem:[#allocation2 + $0x20] sm:$0xff] %v970_v42  ;;  %v974_v46 = vpop.f32.mrb[7].mxu1 }
 0x1fe   :  { %1021 = vst [vmem:[#allocation2 + $0x28] sm:$0xff] %v972_v44 }
 0x1ff   :  { %1356 = shalt.err (!%p1353_p4)
}
 0x200   :  { %s1357_s12 = scalar_lea.hbm %s1798_s5, 896 }
 0x201   :  { %p1358_p5 = scmp.ne.s32.totalorder %s1798_s5, %s1357_s12  ;;  %p1361_p6 = scmp.lt.u32.totalorder %s1357_s12, %s1798_s5 }
 0x203   :  { %p1363_p7 = pnand %p1361_p6, %p1358_p5 }
 0x205   :  { %1366 = shalt.err (!%p1363_p7)
}
 0x206   :  { %1033 = dma.vmem_to_hbm [thread:$0]  %s1031_s4, 896, %s1798_s5, [#allocation3]  }
 0x207   :  { %1367 = dma.done.wait [#allocation3], 896  }
 0x208   :  { %1368 = vsyncadd [#allocation3], 4294966400 }
 0x209   :  { %1037 = vsyncpa [#allocation3], 1 }

</bundles_post_ra>
